<compile_context>
chip_gen: v7x
topology: tpu7x:2x2x1
jax: 0.10.0
libtpu: 0.0.40
codegen_flags: <defaults>
</compile_context>

<pallas_src>
import jax
import jax.numpy as jnp
from jax.experimental import pallas as pl
from jax.experimental.pallas import tpu as pltpu


# ----------------------------------------------------------------------------
# Pallas kernel: fused gated update for one (batch_tile, layer) grid point
# ----------------------------------------------------------------------------
def gated_kernel(v_ref, h_ref, wzr_v_ref, wzr_h_ref, bzr_ref,
                 wh_v_ref, wh_h_ref, bh_ref, out_ref, vzr_scratch):
    H = h_ref.shape[2]
    mm_dtype = wzr_v_ref.dtype          # f32 or bf16 matmul operands

    v = v_ref[...]                      # (TB, C) f32
    h = h_ref[0]                        # (TB, H) f32

    # v-side contribution of the fused [z|r] gate is identical for every layer:
    # compute it once per batch tile (first layer step) and keep it in VMEM.
    @pl.when(pl.program_id(1) == 0)
    def _():
        vzr_scratch[...] = (
            jnp.dot(v.astype(mm_dtype), wzr_v_ref[...],
                    preferred_element_type=jnp.float32)
            + bzr_ref[...])

    zr = jax.nn.sigmoid(
        vzr_scratch[...]
        + jnp.dot(h.astype(mm_dtype), wzr_h_ref[...],
                  preferred_element_type=jnp.float32))        # (TB, H + C)
    z = zr[:, :H]                                             # (TB, H)
    r = zr[:, H:]                                             # (TB, C)

    h_cand = jnp.tanh(
        jnp.dot((r * v).astype(mm_dtype), wh_v_ref[...],
                preferred_element_type=jnp.float32)
        + jnp.dot(h.astype(mm_dtype), wh_h_ref[...],
                  preferred_element_type=jnp.float32)
        + bh_ref[...])                                        # (TB, H)

    # f32 epilogue (safe on v5e as well, where VPU/EUP have no bf16 path)
    out_ref[0] = (1.0 - z) * h + z * h_cand


def _pick_row_tile(b):
    # Biggest row tile that divides the (8-aligned) batch; full batch otherwise.
    for tb in (512, 256, 128):
        if b > tb and b % tb == 0:
            return tb
    return b


@jax.jit
def _gated_pallas(v, h, wzr_v, wzr_h, bzr, wh_v, wh_h, bh):
    B, C = v.shape
    L, _, H = h.shape
    TB = _pick_row_tile(B)
    nb = B // TB

    const2 = lambda b, l: (0, 0)        # resident weights / biases
    return pl.pallas_call(
        gated_kernel,
        out_shape=jax.ShapeDtypeStruct((L, B, H), jnp.float32),
        grid_spec=pltpu.PrefetchScalarGridSpec(
            num_scalar_prefetch=0,
            grid=(nb, L),
            in_specs=[
                pl.BlockSpec((TB, C), lambda b, l: (b, 0)),        # v (layer-invariant)
                pl.BlockSpec((1, TB, H), lambda b, l: (l, b, 0)),  # h
                pl.BlockSpec(wzr_v.shape, const2),
                pl.BlockSpec(wzr_h.shape, const2),
                pl.BlockSpec(bzr.shape, const2),
                pl.BlockSpec(wh_v.shape, const2),
                pl.BlockSpec(wh_h.shape, const2),
                pl.BlockSpec(bh.shape, const2),
            ],
            out_specs=pl.BlockSpec((1, TB, H), lambda b, l: (l, b, 0)),
            scratch_shapes=[pltpu.VMEM((TB, H + C), jnp.float32)],
        ),
        compiler_params=pltpu.CompilerParams(
            dimension_semantics=("parallel", "arbitrary")),
    )(v, h, wzr_v, wzr_h, bzr, wh_v, wh_h, bh)


# ----------------------------------------------------------------------------
# Parameter setup (mirrors init_gated: xavier-normal W, zero b) + one-time pack
# ----------------------------------------------------------------------------
def init_gated_params(key, cond_size, hidden_size):
    in_size = cond_size + hidden_size

    def xavier_normal(k, out_f, in_f):
        std = jnp.sqrt(2.0 / (in_f + out_f))
        return (std * jax.random.normal(k, (out_f, in_f))).astype(jnp.float32)

    k1, k2, k3 = jax.random.split(key, 3)
    return {
        "zt_w": xavier_normal(k1, hidden_size, in_size),   # (H, C+H) torch layout
        "zt_b": jnp.zeros((hidden_size,), jnp.float32),
        "rt_w": xavier_normal(k2, cond_size, in_size),     # (C, C+H)
        "rt_b": jnp.zeros((cond_size,), jnp.float32),
        "ht_w": xavier_normal(k3, hidden_size, in_size),   # (H, C+H)
        "ht_b": jnp.zeros((hidden_size,), jnp.float32),
    }


def pack_gated_weights(params, cond_size, hidden_size, weights_dtype=jnp.float32):
    """Pre-transpose / pre-pack weights once (not per forward call)."""
    C, H = cond_size, hidden_size
    wz = params["zt_w"].T                                  # (C+H, H)
    wr = params["rt_w"].T                                  # (C+H, C)
    wh = params["ht_w"].T                                  # (C+H, H)
    wzr = jnp.concatenate([wz, wr], axis=1)                # (C+H, H+C) fused [z|r]
    bzr = jnp.concatenate([params["zt_b"], params["rt_b"]])[None, :]
    return {
        "wzr_v": wzr[:C].astype(weights_dtype),            # (C, H+C)
        "wzr_h": wzr[C:].astype(weights_dtype),            # (H, H+C)
        "bzr":   bzr.astype(jnp.float32),                  # (1, H+C)
        "wh_v":  wh[:C].astype(weights_dtype),             # (C, H)
        "wh_h":  wh[C:].astype(weights_dtype),             # (H, H)
        "bh":    params["ht_b"][None, :].astype(jnp.float32),  # (1, H)
    }


# ----------------------------------------------------------------------------
# Python wrapper reproducing Gated.forward semantics
# ----------------------------------------------------------------------------
def gated_forward(packed, rnn_type, num_layers, v, hidden):
    """v: (batch, cond_size).  hidden: (L, B, H) or tuple (h, c) for LSTM."""
    h_state = hidden[0] if rnn_type == "LSTM" else hidden
    L, B, H = h_state.shape
    assert L == num_layers and B == v.shape[0]

    v32 = v.astype(jnp.float32)
    h32 = h_state.astype(jnp.float32)

    # Pad batch to a multiple of 8 so row tiles are sublane-aligned.
    B_pad = -(-B // 8) * 8
    if B_pad != B:
        v32 = jnp.pad(v32, ((0, B_pad - B), (0, 0)))
        h32 = jnp.pad(h32, ((0, 0), (0, B_pad - B), (0, 0)))

    new_h = _gated_pallas(v32, h32, packed["wzr_v"], packed["wzr_h"],
                          packed["bzr"], packed["wh_v"], packed["wh_h"],
                          packed["bh"])
    new_h = new_h[:, :B, :]

    if rnn_type == "LSTM":
        return (new_h, hidden[1])
    return new_h


# pure-JAX reference for correctness checking
def gated_forward_ref(params, rnn_type, num_layers, v, hidden):
    h_state = hidden[0] if rnn_type == "LSTM" else hidden
    L, B, H = h_state.shape
    v_exp = jnp.broadcast_to(v[None, :, :], (L, B, v.shape[1]))
    inp = jnp.concatenate([v_exp, h_state], axis=-1)
    z = jax.nn.sigmoid(inp @ params["zt_w"].T + params["zt_b"])
    r = jax.nn.sigmoid(inp @ params["rt_w"].T + params["rt_b"])
    inp2 = jnp.concatenate([r * v_exp, h_state], axis=-1)
    hc = jnp.tanh(inp2 @ params["ht_w"].T + params["ht_b"])
    new_h = (1.0 - z) * h_state + z * hc
    return (new_h, hidden[1]) if rnn_type == "LSTM" else new_h


if __name__ == "__main__":
    cond_size, hidden_size = 32, 64
    num_layers, batch = 2, 4

    key = jax.random.PRNGKey(0)
    kp, kv, kh, kc = jax.random.split(key, 4)

    params = init_gated_params(kp, cond_size, hidden_size)
    v = jax.random.normal(kv, (batch, cond_size), dtype=jnp.float32)
    h0 = jax.random.normal(kh, (num_layers, batch, hidden_size), dtype=jnp.float32)
    c0 = jax.random.normal(kc, (num_layers, batch, hidden_size), dtype=jnp.float32)

    # f32 weights: tight tolerance
    packed_f32 = pack_gated_weights(params, cond_size, hidden_size, jnp.float32)

    out_gru = jax.block_until_ready(
        gated_forward(packed_f32, "GRU", num_layers, v, h0))
    ref_gru = gated_forward_ref(params, "GRU", num_layers, v, h0)
    assert jnp.allclose(out_gru, ref_gru, atol=1e-5, rtol=1e-5)

    out_lstm = gated_forward(packed_f32, "LSTM", num_layers, v, (h0, c0))
    out_lstm = (jax.block_until_ready(out_lstm[0]), out_lstm[1])
    ref_lstm = gated_forward_ref(params, "LSTM", num_layers, v, (h0, c0))
    assert jnp.allclose(out_lstm[0], ref_lstm[0], atol=1e-5, rtol=1e-5)
    assert jnp.allclose(out_lstm[1], ref_lstm[1])

    # bf16 weights + bf16 matmul operands, f32 accumulation (v6e/v7x MXU path):
    # looser tolerance per review.
    packed_bf16 = pack_gated_weights(params, cond_size, hidden_size, jnp.bfloat16)
    out_bf16 = jax.block_until_ready(
        gated_forward(packed_bf16, "GRU", num_layers, v, h0))
    assert jnp.allclose(out_bf16, ref_gru, atol=3e-2, rtol=3e-2)

    print("KERNEL_OK")
</pallas_src>

<mosaic_0001>
module attributes {stable_mosaic.version = 11 : i64} {
  func.func @gated_kernel(%arg0: i32, %arg1: i32, %arg2: memref<8x32xf32, #tpu.memory_space<vmem>>, %arg3: memref<1x8x64xf32, #tpu.memory_space<vmem>>, %arg4: memref<32x96xf32, #tpu.memory_space<vmem>>, %arg5: memref<64x96xf32, #tpu.memory_space<vmem>>, %arg6: memref<1x96xf32, #tpu.memory_space<vmem>>, %arg7: memref<32x64xf32, #tpu.memory_space<vmem>>, %arg8: memref<64x64xf32, #tpu.memory_space<vmem>>, %arg9: memref<1x64xf32, #tpu.memory_space<vmem>>, %arg10: memref<1x8x64xf32, #tpu.memory_space<vmem>>, %arg11: memref<8x96xf32, #tpu.memory_space<vmem>>) attributes {dimension_semantics = [#tpu.dimension_semantics<parallel>, #tpu.dimension_semantics<arbitrary>], iteration_bounds = array<i64: 1, 2>, scalar_prefetch = 0 : i64, scratch_operands = 1 : i64, tpu.core_type = #tpu.core_type<tc>, window_params = [{transform_indices = @transform_0, window_bounds = array<i64: 8, 32>}, {transform_indices = @transform_1, window_bounds = array<i64: 1, 8, 64>}, {pipeline_mode = #tpu.pipeline_mode<synchronous>, transform_indices = @transform_2, window_bounds = array<i64: 32, 96>}, {pipeline_mode = #tpu.pipeline_mode<synchronous>, transform_indices = @transform_3, window_bounds = array<i64: 64, 96>}, {pipeline_mode = #tpu.pipeline_mode<synchronous>, transform_indices = @transform_4, window_bounds = array<i64: 1, 96>}, {pipeline_mode = #tpu.pipeline_mode<synchronous>, transform_indices = @transform_5, window_bounds = array<i64: 32, 64>}, {pipeline_mode = #tpu.pipeline_mode<synchronous>, transform_indices = @transform_6, window_bounds = array<i64: 64, 64>}, {pipeline_mode = #tpu.pipeline_mode<synchronous>, transform_indices = @transform_7, window_bounds = array<i64: 1, 64>}, {transform_indices = @transform_8, window_bounds = array<i64: 1, 8, 64>}]} {
    %c0 = arith.constant 0 : index
    %c0_0 = arith.constant 0 : index
    %0 = vector.load %arg2[%c0, %c0_0] : memref<8x32xf32, #tpu.memory_space<vmem>>, vector<8x32xf32>
    %c0_1 = arith.constant 0 : index
    %c0_2 = arith.constant 0 : index
    %c0_3 = arith.constant 0 : index
    %1 = vector.load %arg3[%c0_1, %c0_2, %c0_3] : memref<1x8x64xf32, #tpu.memory_space<vmem>>, vector<1x8x64xf32>
    %2 = vector.shape_cast %1 : vector<1x8x64xf32> to vector<8x64xf32>
    %c0_i32 = arith.constant 0 : i32
    %3 = arith.cmpi eq, %arg1, %c0_i32 : i32
    %4 = arith.extui %3 : i1 to i32
    %c0_i32_4 = arith.constant 0 : i32
    %5 = arith.cmpi ne, %4, %c0_i32_4 : i32
    scf.if %5 {
      %c0_22 = arith.constant 0 : index
      %c0_23 = arith.constant 0 : index
      %35 = vector.load %arg4[%c0_22, %c0_23] : memref<32x96xf32, #tpu.memory_space<vmem>>, vector<32x96xf32>
      %cst_24 = arith.constant dense<0.000000e+00> : vector<8x96xf32>
      %36 = tpu.matmul %0, %35, %cst_24 {dimension_numbers = #tpu.dot_dimension_numbers<[1], [0], [0], [1], [0, 0, 1, 1], [], []>} : vector<8x32xf32>, vector<32x96xf32>, vector<8x96xf32> -> vector<8x96xf32>
      %c0_25 = arith.constant 0 : index
      %c0_26 = arith.constant 0 : index
      %37 = vector.load %arg6[%c0_25, %c0_26] : memref<1x96xf32, #tpu.memory_space<vmem>>, vector<1x96xf32>
      %38 = vector.broadcast %37 : vector<1x96xf32> to vector<8x96xf32>
      %39 = arith.addf %36, %38 : vector<8x96xf32>
      %c0_27 = arith.constant 0 : index
      %c0_28 = arith.constant 0 : index
      %40 = vector.load %arg11[%c0_27, %c0_28] : memref<8x96xf32, #tpu.memory_space<vmem>>, vector<8x96xf32>
      tpu.vector_store %arg11[%c0_27, %c0_28], %39 {strides = array<i32>} : memref<8x96xf32, #tpu.memory_space<vmem>>, vector<8x96xf32>,
    } else {
    }
    %c0_5 = arith.constant 0 : index
    %c0_6 = arith.constant 0 : index
    %6 = vector.load %arg11[%c0_5, %c0_6] : memref<8x96xf32, #tpu.memory_space<vmem>>, vector<8x96xf32>
    %c0_7 = arith.constant 0 : index
    %c0_8 = arith.constant 0 : index
    %7 = vector.load %arg5[%c0_7, %c0_8] : memref<64x96xf32, #tpu.memory_space<vmem>>, vector<64x96xf32>
    %cst = arith.constant dense<0.000000e+00> : vector<8x96xf32>
    %8 = tpu.matmul %2, %7, %cst {dimension_numbers = #tpu.dot_dimension_numbers<[1], [0], [0], [1], [0, 0, 1, 1], [], []>} : vector<8x64xf32>, vector<64x96xf32>, vector<8x96xf32> -> vector<8x96xf32>
    %9 = arith.addf %6, %8 : vector<8x96xf32>
    %10 = arith.negf %9 : vector<8x96xf32>
    %11 = math.exp %10 : vector<8x96xf32>
    %cst_9 = arith.constant 1.000000e+00 : f32
    %12 = vector.broadcast %cst_9 : f32 to vector<8x96xf32>
    %13 = arith.addf %12, %11 : vector<8x96xf32>
    %14 = arith.divf %12, %13 : vector<8x96xf32>
    %15 = vector.extract_strided_slice %14 {offsets = [0, 0], sizes = [8, 64], strides = [1, 1]} : vector<8x96xf32> to vector<8x64xf32>
    %16 = vector.extract_strided_slice %14 {offsets = [0, 64], sizes = [8, 32], strides = [1, 1]} : vector<8x96xf32> to vector<8x32xf32>
    %17 = arith.mulf %16, %0 : vector<8x32xf32>
    %c0_10 = arith.constant 0 : index
    %c0_11 = arith.constant 0 : index
    %18 = vector.load %arg7[%c0_10, %c0_11] : memref<32x64xf32, #tpu.memory_space<vmem>>, vector<32x64xf32>
    %cst_12 = arith.constant dense<0.000000e+00> : vector<8x64xf32>
    %19 = tpu.matmul %17, %18, %cst_12 {dimension_numbers = #tpu.dot_dimension_numbers<[1], [0], [0], [1], [0, 0, 1, 1], [], []>} : vector<8x32xf32>, vector<32x64xf32>, vector<8x64xf32> -> vector<8x64xf32>
    %c0_13 = arith.constant 0 : index
    %c0_14 = arith.constant 0 : index
    %20 = vector.load %arg8[%c0_13, %c0_14] : memref<64x64xf32, #tpu.memory_space<vmem>>, vector<64x64xf32>
    %cst_15 = arith.constant dense<0.000000e+00> : vector<8x64xf32>
    %21 = tpu.matmul %2, %20, %cst_15 {dimension_numbers = #tpu.dot_dimension_numbers<[1], [0], [0], [1], [0, 0, 1, 1], [], []>} : vector<8x64xf32>, vector<64x64xf32>, vector<8x64xf32> -> vector<8x64xf32>
    %22 = arith.addf %19, %21 : vector<8x64xf32>
    %c0_16 = arith.constant 0 : index
    %c0_17 = arith.constant 0 : index
    %23 = vector.load %arg9[%c0_16, %c0_17] : memref<1x64xf32, #tpu.memory_space<vmem>>, vector<1x64xf32>
    %24 = vector.broadcast %23 : vector<1x64xf32> to vector<8x64xf32>
    %25 = arith.addf %22, %24 : vector<8x64xf32>
    %26 = math.tanh %25 : vector<8x64xf32>
    %cst_18 = arith.constant 1.000000e+00 : f32
    %27 = vector.broadcast %cst_18 : f32 to vector<8x64xf32>
    %28 = arith.subf %27, %15 : vector<8x64xf32>
    %29 = arith.mulf %28, %2 : vector<8x64xf32>
    %30 = arith.mulf %15, %26 : vector<8x64xf32>
    %31 = arith.addf %29, %30 : vector<8x64xf32>
    %c0_19 = arith.constant 0 : index
    %c0_20 = arith.constant 0 : index
    %c0_21 = arith.constant 0 : index
    %32 = vector.load %arg10[%c0_19, %c0_20, %c0_21] : memref<1x8x64xf32, #tpu.memory_space<vmem>>, vector<1x8x64xf32>
    %33 = vector.shape_cast %32 : vector<1x8x64xf32> to vector<8x64xf32>
    %34 = vector.shape_cast %31 : vector<8x64xf32> to vector<1x8x64xf32>
    tpu.vector_store %arg10[%c0_19, %c0_20, %c0_21], %34 {strides = array<i32>} : memref<1x8x64xf32, #tpu.memory_space<vmem>>, vector<1x8x64xf32>,
    return
  }
  func.func @transform_0(%arg0: i32, %arg1: i32) -> (i32, i32) {
    %c0_i32 = arith.constant 0 : i32
    %c0_i32_0 = arith.constant 0 : i32
    return %arg0, %c0_i32 : i32, i32
  }
  func.func @transform_1(%arg0: i32, %arg1: i32) -> (i32, i32, i32) {
    %c0_i32 = arith.constant 0 : i32
    %c0_i32_0 = arith.constant 0 : i32
    return %arg1, %arg0, %c0_i32 : i32, i32, i32
  }
  func.func @transform_2(%arg0: i32, %arg1: i32) -> (i32, i32) {
    %c0_i32 = arith.constant 0 : i32
    %c0_i32_0 = arith.constant 0 : i32
    %c0_i32_1 = arith.constant 0 : i32
    return %c0_i32, %c0_i32_0 : i32, i32
  }
  func.func @transform_3(%arg0: i32, %arg1: i32) -> (i32, i32) {
    %c0_i32 = arith.constant 0 : i32
    %c0_i32_0 = arith.constant 0 : i32
    %c0_i32_1 = arith.constant 0 : i32
    return %c0_i32, %c0_i32_0 : i32, i32
  }
  func.func @transform_4(%arg0: i32, %arg1: i32) -> (i32, i32) {
    %c0_i32 = arith.constant 0 : i32
    %c0_i32_0 = arith.constant 0 : i32
    %c0_i32_1 = arith.constant 0 : i32
    return %c0_i32, %c0_i32_0 : i32, i32
  }
  func.func @transform_5(%arg0: i32, %arg1: i32) -> (i32, i32) {
    %c0_i32 = arith.constant 0 : i32
    %c0_i32_0 = arith.constant 0 : i32
    %c0_i32_1 = arith.constant 0 : i32
    return %c0_i32, %c0_i32_0 : i32, i32
  }
  func.func @transform_6(%arg0: i32, %arg1: i32) -> (i32, i32) {
    %c0_i32 = arith.constant 0 : i32
    %c0_i32_0 = arith.constant 0 : i32
    %c0_i32_1 = arith.constant 0 : i32
    return %c0_i32, %c0_i32_0 : i32, i32
  }
  func.func @transform_7(%arg0: i32, %arg1: i32) -> (i32, i32) {
    %c0_i32 = arith.constant 0 : i32
    %c0_i32_0 = arith.constant 0 : i32
    %c0_i32_1 = arith.constant 0 : i32
    return %c0_i32, %c0_i32_0 : i32, i32
  }
  func.func @transform_8(%arg0: i32, %arg1: i32) -> (i32, i32, i32) {
    %c0_i32 = arith.constant 0 : i32
    %c0_i32_0 = arith.constant 0 : i32
    return %arg1, %arg0, %c0_i32 : i32, i32, i32
  }
}

</mosaic_0001>

<bundles_post_ra>
// kernel: _gated_pallas.1
= control target key start
LH: loop header
LB: loop body
LE: loop exit
PB: predicated region body
PF: predicated region fallthrough
CT: control target
= control target key end

     0   :  { %s1895_s0 = inlined_call_operand.hbm [shape: f32[8,32], index: 0, kind: input, shape index: {}]   ;;  %s1896_s1 = inlined_call_operand.hbm [shape: f32[2,8,64], index: 1, kind: input, shape index: {}]   ;;  %s1897_s2 = inlined_call_operand.hbm [shape: f32[32,96], index: 2, kind: input, shape index: {}]   ;;  %s1898_s3 = inlined_call_operand.hbm [shape: f32[64,96], index: 3, kind: input, shape index: {}]   ;;  %s1899_s4 = inlined_call_operand.vmem [shape: f32[1,96], index: 4, kind: input, shape index: {}]   ;;  %s1900_s5 = inlined_call_operand.hbm [shape: f32[32,64], index: 5, kind: input, shape index: {}]   ;;  %s1901_s6 = inlined_call_operand.hbm [shape: f32[64,64], index: 6, kind: input, shape index: {}]   ;;  %s1902_s7 = inlined_call_operand.vmem [shape: f32[1,64], index: 7, kind: input, shape index: {}]   ;;  %s1903_s8 = inlined_call_operand.hbm [shape: f32[2,8,64], index: 8, kind: output, shape index: {}]  }
   0x1   :  { %1910 = sst [smem:[#allocation21_spill]] %s1895_s0 }
   0x2   :  { %1911 = sst [smem:[#allocation22_spill]] %s1902_s7 }
   0x3   :  { %1912 = sst [smem:[#allocation23_spill]] %s1903_s8 }
   0x4   :  { %13 = vsyncpa [#allocation4], 0 }
   0x5   :  { %14 = vsyncpa [#allocation7], 0 }
   0x6   :  { %16 = vsyncpa [#allocation7 + $0x1], 0 }
   0x7   :  { %17 = vsyncpa [#allocation10], 0 }
   0x8   :  { %18 = vsyncpa [#allocation13], 0 }
   0x9   :  { %19 = vsyncpa [#allocation5], 0 }
   0xa   :  { %21 = vsyncpa [#allocation5 + $0x1], 0  ;;  %s1537_s27 = smov 0   ;;  %s1539_s28 = smov 0  }
   0xb   :  { %s1541_s29 = smov 0   ;;  %s1543_s30 = smov 0  }
   0xc   :  { %s1545_s9 = smov 0   ;;  %s1547_s10 = smov 0  }
   0xd LB: > { %s1476_s11 = smov [#allocation8]   ;;  %s1568_s13 = sadd.s32 4294967295, %s1474_s10   ;;  %s1474_s10 = sphi %s1547_s10, %s27_s10   ;;  %s1470_s9 = sphi %s1545_s9, %s1942_s9   ;;  %s1466_s30 = sphi %s1543_s30, %s1941_s30   ;;  %s1462_s29 = sphi %s1541_s29, %s1940_s29   ;;  %s1458_s28 = sphi %s1539_s28, %s1939_s28   ;;  %s1454_s27 = sphi %s1537_s27, %s1938_s27  }
   0xe   : > { %s277_s12 = sshll.u32 %s1476_s11, 4  ;;  %p925_p0 = scmp.ge.s32.totalorder %s1474_s10, 1  ;;  %s1573_s12 = int_to_ptr.vmem [resolvable:$true] %s277_s12 }
   0xf   : > { %p1905_p1 = scmp.eq.s32.totalorder %s1568_s13, 0  ;;  %p252_p2 = scmp.lt.s32.totalorder %s1474_s10, 3 }
  0x10   : > { %s1477_s15 = smov [#allocation9]   ;;  %s1478_s18 = smov [#allocation3]  }
  0x11   : > { %p1575_p3 = pnand %p925_p0, %p252_p2  ;;  %s290_s16 = sshll.u32 %s1477_s15, 4  ;;  %s1588_s16 = int_to_ptr.vmem [resolvable:$true] %s290_s16 }
  0x12   : > { %s1590_s19 = sshll.u32 %s1478_s18, 4  ;;  %s1206_s22 = scalar_lea.hbm %s1897_s2, 512  ;;  %s268_s19 = int_to_ptr.vmem [resolvable:$true] %s1590_s19 }
  0x13   : > { %s1913_s14 = scalar_select %p1575_p3, 1, 0 }
  0x14   : > { %p1102_p5 = pneg %p1575_p3  ;;  %p1207_p7 = scmp.ne.s32.totalorder %s1897_s2, %s1206_s22 }
  0x15   : > { %p1213_p11 = scmp.lt.u32.totalorder %s1206_s22, %s1897_s2 }
  0x16   : > { %p1584_p6 = pnand %p1102_p5, %p1905_p1 }
  0x18   : > { %p1600_p8 = pneg %p1584_p6 }
  0x1a   : > { %p1209_p9 = pnand %p1600_p8, %p1207_p7 }
  0x1c   : > { %p1210_p10 = pneg %p1209_p9 }
  0x1e   : > { %p1215_p12 = pnand %p1213_p11, %p1210_p10 }
  0x20   : > { %1218 = shalt.err (!%p1215_p12)
}
  0x21   : > { %s1219_s15 = scalar_lea.vmem %s1573_s12, 512  ;;  %p1227_p5 = scmp.lt.s32.totalorder %s1573_s12, %s1573_s12 }
  0x22   : > { %p1220_p13 = scmp.ne.s32.totalorder %s1573_s12, %s1219_s15  ;;  %p1228_p4 = scmp.lt.s32.totalorder %s1219_s15, %s1219_s15 }
  0x24   : > { %p1222_p0 = pnand %p1220_p13, %p1600_p8  ;;  %p1229_p7 = por %p1228_p4, %p1227_p5 }
  0x26   : > { %p1223_p2 = pneg %p1222_p0 }
  0x28   : > { %p1230_p9 = pnand %p1229_p7, %p1223_p2 }
  0x2a   : > { %1233 = shalt.err (!%p1230_p9)
}
  0x2b   : > { %s1907_s18 = smov 128   ;;  %s1480_s20 = smov 8  }
  0x2c   : > { %1108 = dma.hbm_to_vmem [thread:$0]  (!%p1584_p6), %s1897_s2, 512, %s1573_s12, [#allocation7], %s1907_s18, %s1907_s18, %s1480_s20  }
  0x2d   : > { %s1234_s26 = scalar_lea.hbm %s1898_s3, 1024 }
  0x2e   : > { %p1235_p4 = scmp.ne.s32.totalorder %s1898_s3, %s1234_s26  ;;  %p1241_p12 = scmp.lt.u32.totalorder %s1234_s26, %s1898_s3 }
  0x30   : > { %p1237_p10 = pnand %p1235_p4, %p1600_p8 }
  0x32   : > { %p1238_p11 = pneg %p1237_p10 }
  0x34   : > { %p1243_p13 = pnand %p1241_p12, %p1238_p11 }
  0x36   : > { %1246 = shalt.err (!%p1243_p13)
}
  0x37   : > { %s1247_s12 = scalar_lea.vmem %s1588_s16, 1024  ;;  %p1255_p7 = scmp.lt.s32.totalorder %s1588_s16, %s1588_s16 }
  0x38   : > { %p1248_p0 = scmp.ne.s32.totalorder %s1588_s16, %s1247_s12  ;;  %p1256_p9 = scmp.lt.s32.totalorder %s1247_s12, %s1247_s12 }
  0x3a   : > { %p1250_p2 = pnand %p1248_p0, %p1600_p8  ;;  %p1257_p4 = por %p1256_p9, %p1255_p7 }
  0x3c   : > { %p1251_p5 = pneg %p1250_p2 }
  0x3e   : > { %p1258_p10 = pnand %p1257_p4, %p1251_p5 }
  0x40   : > { %1261 = shalt.err (!%p1258_p10)
}
  0x41   : > { %1111 = dma.hbm_to_vmem [thread:$0]  (!%p1584_p6), %s1898_s3, 1024, %s1588_s16, [#allocation10], %s1907_s18, %s1907_s18, %s1480_s20  }
  0x42   : > { %s1916_s0 = sld [smem:[#allocation21_spill]] }
  0x48   : > { %s1262_s23 = scalar_lea.hbm %s1916_s0, 128 }
  0x49   : > { %p1263_p11 = scmp.ne.s32.totalorder %s1916_s0, %s1262_s23  ;;  %p1269_p0 = scmp.lt.u32.totalorder %s1262_s23, %s1916_s0 }
  0x4b   : > { %p1265_p12 = pnand %p1263_p11, %p1600_p8 }
  0x4d   : > { %p1266_p13 = pneg %p1265_p12 }
  0x4f   : > { %p1271_p2 = pnand %p1269_p0, %p1266_p13 }
  0x51   : > { %1274 = shalt.err (!%p1271_p2)
}
  0x52   : > { %s1275_s12 = scalar_lea.vmem %s268_s19, 128  ;;  %p1283_p4 = scmp.lt.s32.totalorder %s268_s19, %s268_s19 }
  0x53   : > { %p1276_p5 = scmp.ne.s32.totalorder %s268_s19, %s1275_s12  ;;  %p1284_p10 = scmp.lt.s32.totalorder %s1275_s12, %s1275_s12 }
  0x55   : > { %p1278_p7 = pnand %p1276_p5, %p1600_p8  ;;  %p1285_p1 = por %p1284_p10, %p1283_p4 }
  0x57   : > { %p1279_p9 = pneg %p1278_p7 }
  0x59   : > { %p1286_p3 = pnand %p1285_p1, %p1279_p9 }
  0x5b   : > { %1289 = shalt.err (!%p1286_p3)
}
  0x5c   : > { %1105 = dma.hbm_to_vmem [thread:$0]  (!%p1584_p6), %s1916_s0, 128, %s268_s19, [#allocation4]  }
  0x5d   : > { %s1481_s8 = smov [#allocation11]   ;;  %s1482_s22 = smov [#allocation12]  }
  0x5e   : > { %s306_s21 = sshll.u32 %s1481_s8, 4  ;;  %s319_s23 = sshll.u32 %s1482_s22, 4  ;;  %s307_s21 = int_to_ptr.vmem [resolvable:$true] %s306_s21  ;;  %s320_s23 = int_to_ptr.vmem [resolvable:$true] %s319_s23 }
  0x5f   : > { %s1290_s11 = scalar_lea.hbm %s1900_s5, 512 }
  0x60   : > { %p1291_p1 = scmp.ne.s32.totalorder %s1900_s5, %s1290_s11  ;;  %p1297_p12 = scmp.lt.u32.totalorder %s1290_s11, %s1900_s5 }
  0x62   : > { %p1293_p3 = pnand %p1291_p1, %p1600_p8 }
  0x64   : > { %p1294_p11 = pneg %p1293_p3 }
  0x66   : > { %p1299_p13 = pnand %p1297_p12, %p1294_p11 }
  0x68   : > { %1302 = shalt.err (!%p1299_p13)
}
  0x69   : > { %s1303_s19 = scalar_lea.vmem %s307_s21, 512  ;;  %p1311_p7 = scmp.lt.s32.totalorder %s307_s21, %s307_s21 }
  0x6a   : > { %p1304_p0 = scmp.ne.s32.totalorder %s307_s21, %s1303_s19  ;;  %p1312_p9 = scmp.lt.s32.totalorder %s1303_s19, %s1303_s19 }
  0x6c   : > { %p1306_p2 = pnand %p1304_p0, %p1600_p8  ;;  %p1313_p4 = por %p1312_p9, %p1311_p7 }
  0x6e   : > { %p1307_p5 = pneg %p1306_p2 }
  0x70   : > { %p1314_p10 = pnand %p1313_p4, %p1307_p5 }
  0x72   : > { %1317 = shalt.err (!%p1314_p10)
}
  0x73   : > { %s1917_s7 = smov 128   ;;  %s1318_s26 = scalar_lea.hbm %s1901_s6, 1024 }
  0x74   : > { %1114 = dma.hbm_to_vmem [thread:$0]  (!%p1584_p6), %s1900_s5, 512, %s307_s21, [#allocation10], %s1917_s7, %s1917_s7, %s1480_s20  }
  0x75   : > { %p1319_p1 = scmp.ne.s32.totalorder %s1901_s6, %s1318_s26  ;;  %p1325_p12 = scmp.lt.u32.totalorder %s1318_s26, %s1901_s6 }
  0x77   : > { %p1321_p3 = pnand %p1319_p1, %p1600_p8 }
  0x79   : > { %p1322_p11 = pneg %p1321_p3 }
  0x7b   : > { %p1327_p13 = pnand %p1325_p12, %p1322_p11 }
  0x7d   : > { %1330 = shalt.err (!%p1327_p13)
}
  0x7e   : > { %s1331_s19 = scalar_lea.vmem %s320_s23, 1024  ;;  %p1339_p7 = scmp.lt.s32.totalorder %s320_s23, %s320_s23 }
  0x7f   : > { %p1332_p0 = scmp.ne.s32.totalorder %s320_s23, %s1331_s19  ;;  %p1340_p9 = scmp.lt.s32.totalorder %s1331_s19, %s1331_s19 }
  0x81   : > { %p1334_p2 = pnand %p1332_p0, %p1600_p8  ;;  %p1341_p4 = por %p1340_p9, %p1339_p7 }
  0x83   : > { %p1335_p5 = pneg %p1334_p2 }
  0x85   : > { %p1342_p10 = pnand %p1341_p4, %p1335_p5 }
  0x87   : > { %1345 = shalt.err (!%p1342_p10)
}
  0x88   : > { %1117 = dma.hbm_to_vmem [thread:$0]  (!%p1584_p6), %s1901_s6, 1024, %s320_s23, [#allocation13], %s1917_s7, %s1917_s7, %s1480_s20  }
  0x89   : > { %s924_s17 = sadd.s32 4294967294, %s1474_s10   ;;  %s36_s25 = sadd.s32 1, %s1470_s9 }
  0x8a   : > { %s74_s8 = sadd.s32 1, %s1462_s29  ;;  %p37_p8 = scmp.ge.s32.totalorder %s36_s25, 2 }
  0x8b   : > { %p81_p1 = scmp.ne.s32.totalorder %s1462_s29, %s1458_s28  ;;  %p82_p3 = scmp.eq.s32.totalorder %s1474_s10, 0 }
  0x8c   : > { %p87_p11 = scmp.ne.s32.totalorder %s1458_s28, %s1454_s27  ;;  %s1944_s25 = smov (%p37_p8, %s36_s25), 0 }
  0x8d   : > { %p1721_p12 = por %p82_p3, %p81_p1  ;;  %p1919_p6 = scmp.eq.s32.totalorder %s1568_s13, 0 }
  0x8e   : > { %s69_s23 = ssub.s32 %s1470_s9, %s1944_s25  ;;  %p239_p0 = scmp.eq.s32.totalorder %s1568_s13, 1 }
  0x8f   : > { %p1727_p13 = por %p1919_p6, %p87_p11  ;;  %p72_p2 = scmp.eq.s32.totalorder %s69_s23, 0 }
  0x90   : > { %p245_p5 = scmp.eq.s32.totalorder %s924_s17, 1  ;;  %p1734_p7 = por %p239_p0, %p81_p1 }
  0x91   : > { %p1131_p9 = scmp.lt.s32.totalorder %s1474_s10, 2  ;;  %s336_s11 = sand.u32 1, %s1474_s10  }
  0x92   : > { %s1921_s7 = scalar_select %p1734_p7, 1, 0 }
  0x93   : > { %s1740_s24 = scalar_select %p72_p2, %s1462_s29, %s74_s8  }
  0x94   : > { %p1742_p4 = por %p245_p5, %p87_p11  ;;  %s338_s15 = sand.u32 1, %s1462_s29  }
  0x95   : > { %s932_s12 = sshll.u32 %s338_s15, 3  ;;  %s933_s16 = sshll.u32 %s1470_s9, 7 }
  0x96   : > { %s1922_s26 = scalar_select %p1742_p4, 1, 0 }
  0x97   : > { %s1752_s18 = scalar_lea.hbm %s1896_s1, %s933_s16  ;;  %s340_s17 = scalar_lea.vmem [#allocation6], %s932_s12 }
  0x98   : > { %s348_s8 = sshll.u32 %s340_s17, 4  ;;  %p1756_p10 = pnand %p1131_p9, %p1721_p12  ;;  %s1760_s8 = int_to_ptr.vmem [resolvable:$true] %s348_s8 }
  0x99   : > { %s337_s15 = scalar_lea.sflag [#allocation7], %s336_s11  ;;  %s1346_s0 = scalar_lea.hbm %s1752_s18, 128 }
  0x9a   : > { %p1347_p8 = scmp.ne.s32.totalorder %s1752_s18, %s1346_s0  ;;  %p1348_p1 = pneg %p1756_p10 }
  0x9b   : > { %s1351_s22 = scalar_lea.hbm %s1896_s1, 256  ;;  %p1352_p12 = scmp.lt.u32.totalorder %s1752_s18, %s1896_s1 }
  0x9c   : > { %p1349_p3 = pnand %p1348_p1, %p1347_p8  ;;  %p1353_p6 = scmp.lt.u32.totalorder %s1351_s22, %s1346_s0 }
  0x9d   : > { %p1355_p2 = scmp.lt.u32.totalorder %s1346_s0, %s1752_s18 }
  0x9e   : > { %p1350_p11 = pneg %p1349_p3  ;;  %p1354_p0 = por %p1353_p6, %p1352_p12 }
  0xa0   : > { %p1356_p5 = por %p1355_p2, %p1354_p0 }
  0xa2   : > { %p1357_p9 = pnand %p1356_p5, %p1350_p11 }
  0xa4   : > { %1360 = shalt.err (!%p1357_p9)
}
  0xa5   : > { %s1361_s11 = scalar_lea.vmem %s1760_s8, 128  ;;  %s1483_s17 = smov [#allocation6]  }
  0xa6   : > { %p1362_p8 = scmp.ne.s32.totalorder %s1760_s8, %s1361_s11  ;;  %s1366_s12 = sshll.u32 %s1483_s17, 4  ;;  %s1367_s12 = int_to_ptr.vmem [resolvable:$false] %s1366_s12 }
  0xa7   : > { %s1368_s16 = scalar_lea.vmem %s1367_s12, 256  ;;  %p1369_p7 = scmp.lt.s32.totalorder %s1760_s8, %s1367_s12 }
  0xa8   : > { %p1364_p3 = pnand %p1362_p8, %p1348_p1  ;;  %p1370_p12 = scmp.lt.s32.totalorder %s1368_s16, %s1361_s11 }
  0xaa   : > { %p1365_p4 = pneg %p1364_p3  ;;  %p1371_p6 = por %p1370_p12, %p1369_p7 }
  0xac   : > { %p1372_p0 = pnand %p1371_p6, %p1365_p4 }
  0xae   : > { %1375 = shalt.err (!%p1372_p0)
}
  0xaf   : > { %1121 = dma.hbm_to_vmem [thread:$0]  (!%p1756_p10), %s1752_s18, 128, %s1760_s8, %s337_s15  }
  0xb0   : > { %p1924_p11 = scmp.ne.s32.totalorder %s1913_s14, 0 }
  0xb1   : > { %p1925_p1 = scmp.eq.s32.totalorder (!%p1924_p11), %s1568_s13, 0 }
  0xb2   : > { %357 = sbr.rel (%p1924_p11) target bundleno = 1045 (0x415), region = 52 }
  0xb9   : > { %1429 = dma.done.wait (%p1925_p1), [#allocation4], 128   ;;  %p1926_p2 = pmov %p1925_p1 }
  0xba   : > { %s363_s0 = sand.u32 1, %s1568_s13   ;;  %s365_s22 = sand.u32 1, %s1458_s28  }
  0xbb   : > { %1431 = vsyncadd (%p1926_p2), [#allocation4], 4294967168  ;;  %s1797_s23 = sshll.u32 %s365_s22, 3  ;;  %s364_s18 = scalar_lea.sflag [#allocation7], %s363_s0 }
  0xbc   : > { %s367_s8 = scalar_lea.vmem [#allocation6], %s1797_s23 }
  0xbd   : > { %1433 = dma.done.wait (%p1727_p13), %s364_s18, 128  }
  0xbe   : > { %1435 = vsyncadd (%p1727_p13), %s364_s18, 4294967168  ;;  %p1927_p7 = pmov %p1925_p1 }
  0xbf   : > { %p1928_p4 = pmov %p1925_p1 }
  0xc0   : > { %1437 = dma.done.wait (%p1927_p7), [#allocation7], 512  }
  0xc1   : > { %1439 = vsyncadd (%p1928_p4), [#allocation7], 4294966784  ;;  %p1929_p10 = pmov %p1925_p1 }
  0xc2   : > { %p1930_p5 = pmov %p1925_p1 }
  0xc3   : > { %1441 = dma.done.wait (%p1929_p10), [#allocation10], 1536  }
  0xc4   : > { %1443 = vsyncadd (%p1930_p5), [#allocation10], 4294965760  ;;  %p1931_p9 = pmov %p1925_p1 }
  0xc5   : > { %p1932_p8 = pmov %p1925_p1 }
  0xc6   : > { %1445 = dma.done.wait (%p1931_p9), [#allocation13], 1024  }
  0xc7   : > { %1447 = vsyncadd (%p1932_p8), [#allocation13], 4294966272  ;;  %v416_v0 = vld [vmem:[#allocation3] sm:$0xff]  ;;  %v1816_v1 = vld [vmem:[%s367_s8] sm:$0xff]  ;;  %s415_s14 = scalar_lea.vmem [#allocation14], %s1797_s23  ;;  %p942_p13 = scmp.ne.s32.totalorder %s1466_s30, 0 }
  0xc8   : > { %v422_v2 = vld [vmem:[#allocation8] sm:$0xff] (!%p942_p13)  ;;  %v423_v3 = vld [vmem:[#allocation8 + $0x8] sm:$0xff] (!%p942_p13)  ;;  %v424_v4 = vld [vmem:[#allocation8 + $0x10] sm:$0xff] (!%p942_p13)  ;;  %v1484_v5 = vmov (!%p942_p13), 0.0|0.0   ;;  %vm1485_vm0 = vmmov (!%p942_p13), 0   ;;  %v1486_v8 = vmov (!%p942_p13), 0.0  }
  0xc9   : > { %421 = sbr.rel (%p942_p13) target bundleno = 425 (0x1a9), region = 80  ;;  %1042 = vmatprep.subr.bf16.mxu0 (!%p942_p13), %v1484_v5  ;;  %v1043_v6 = vpack.c.bf16 (!%p942_p13), %v423_v3, %v422_v2  ;;  %v425_v7 = vld [vmem:[#allocation8 + $0x18] sm:$0xff] (!%p942_p13)  ;;  %990 = vmatprep.mubr.msk.f32.mxu0 (!%p942_p13), %vm1485_vm0, %v1486_v8  ;;  %vm433_vm1 = vcmask (!%p942_p13), 261120   ;;  %v943_v10 = vld [vmem:[%s1899_s4] ss:$0 sm:$0xff] (!%p942_p13)  ;;  %vm507_vm2 = vcmask (!%p942_p13), 785408  }
  0xca   : > { %v1046_v9 = vpack.c.bf16 (!%p942_p13), %v425_v7, %v424_v4 }
  0xcb   : > { %1044 = vmatpush3.bf16.msra.mxu0 (!%p942_p13), %v1043_v6 }
  0xcc   : > { %1045 = vmatprep.subr.bf16.mxu0 (!%p942_p13), %v1484_v5 }
  0xcf   : > { %1047 = vmatpush3.bf16.msra.mxu0 (!%p942_p13), %v1046_v9 }
  0xd2   : > { %991 = vmatmul.mubr.msk.f32.vlgmr.msra.gmra.mrb[0].mxu0 %vm433_vm1, %v416_v0 }
 0x1a5   : > { %v503_v11 = vpop.f32.mrb[0].mxu0 }
 0x1a6   : > { %v504_v12 = vadd.f32 %v943_v10, %v503_v11  ;;  %v992_v13 = vpop.f32.mrb[1].mxu0 }
 0x1a8   : > { %508 = vst.msk [vmem:[#allocation2] sm:$0xff] %vm507_vm2, %v504_v12 }
 0x1a9 PF: > { %v510_v14 = vld [vmem:[#allocation9] sm:$0xff]  ;;  %v511_v15 = vld [vmem:[#allocation9 + $0x8] sm:$0xff]  ;;  %v512_v16 = vld [vmem:[#allocation9 + $0x10] sm:$0xff]  ;;  %v1487_v17 = vmov 0.0|0.0   ;;  %vm1488_vm3 = vmmov 0   ;;  %v1489_v20 = vmov 0.0  }
 0x1aa   : > { %1048 = vmatprep.subr.bf16.mxu0 %v1487_v17  ;;  %v1049_v18 = vpack.c.bf16 %v511_v15, %v510_v14  ;;  %v513_v19 = vld [vmem:[#allocation9 + $0x18] sm:$0xff]  ;;  %1009 = vmatprep.mubr.msk.f32.mxu0 %vm1488_vm3, %v1489_v20  ;;  %s1490_s15 = smov 64   ;;  %v514_v22 = vld [vmem:[#allocation9 + $0x20] sm:$0xff]  ;;  %v515_v23 = vld [vmem:[#allocation9 + $0x28] sm:$0xff]  ;;  %vm518_vm4 = vcmask 523264   ;;  %vm689_vm5 = vcmask 261120  }
 0x1ab   : > { %600 = vrot.lane.b32.xlu0 %v416_v0, %s1490_s15  ;;  %1060 = vmatprep.subr.bf16.mxu1 %v1487_v17  ;;  %v1052_v21 = vpack.c.bf16 %v513_v19, %v512_v16  ;;  %v1055_v24 = vpack.c.bf16 %v515_v23, %v514_v22  ;;  %v516_v25 = vld [vmem:[#allocation9 + $0x30] sm:$0xff]  ;;  %v517_v26 = vld [vmem:[#allocation9 + $0x38] sm:$0xff]  ;;  %v608_v28 = vld [vmem:[#allocation12] sm:$0xff]  ;;  %s1933_s11 = sld [smem:[#allocation22_spill]]  ;;  %s951_s17 = sshll.u32 %s1466_s30, 7 }
 0x1ac   : > { %1050 = vmatpush3.bf16.msra.mxu0 %v1049_v18  ;;  %1028 = vmatprep.mubr.msk.f32.mxu1 %vm1488_vm3, %v1489_v20  ;;  %v1058_v27 = vpack.c.bf16 %v517_v26, %v516_v25  ;;  %v609_v29 = vld [vmem:[#allocation12 + $0x8] sm:$0xff]  ;;  %v610_v30 = vld [vmem:[#allocation12 + $0x10] sm:$0xff]  ;;  %v611_v32 = vld [vmem:[#allocation12 + $0x18] sm:$0xff]  ;;  %s791_s12 = sshll.u32 %s415_s14, 4  ;;  %s1934_s18 = sld [smem:[#allocation23_spill]]  ;;  %s1844_s12 = int_to_ptr.vmem [resolvable:$true] %s791_s12 }
 0x1ad   : > { %1051 = vmatprep.subr.bf16.mxu0 %v1487_v17  ;;  %v1061_v31 = vpack.c.bf16 %v609_v29, %v608_v28  ;;  %v604_v33 = vld [vmem:[#allocation11] sm:$0xff]  ;;  %v605_v34 = vld [vmem:[#allocation11 + $0x8] sm:$0xff]  ;;  %v1064_v35 = vpack.c.bf16 %v611_v32, %v610_v30  ;;  %v606_v37 = vld [vmem:[#allocation11 + $0x10] sm:$0xff]  ;;  %s777_s30 = scalar_lea.sflag [#allocation5], %s365_s22  ;;  %s1376_s13 = scalar_lea.vmem %s1844_s12, 128 }
 0x1ae   : > { %v1073_v36 = vpack.c.bf16 %v605_v34, %v604_v33  ;;  %v607_v38 = vld [vmem:[#allocation11 + $0x18] sm:$0xff]  ;;  %v612_v39 = vld [vmem:[#allocation12 + $0x20] sm:$0xff]  ;;  %v613_v40 = vld [vmem:[#allocation12 + $0x28] sm:$0xff]  ;;  %p1377_p3 = scmp.ne.s32.totalorder %s1844_s12, %s1376_s13  ;;  %p1935_p12 = scmp.ne.s32.totalorder %s1921_s7, 0 }
 0x1af   : > { %1062 = vmatpush3.bf16.msra.mxu1 %v1061_v31  ;;  %v1076_v41 = vpack.c.bf16 %v607_v38, %v606_v37  ;;  %v1067_v42 = vpack.c.bf16 %v613_v40, %v612_v39  ;;  %v614_v43 = vld [vmem:[#allocation12 + $0x30] sm:$0xff]  ;;  %v615_v44 = vld [vmem:[#allocation12 + $0x38] sm:$0xff]  ;;  %v509_v46 = vld [vmem:[#allocation2] sm:$0xff]  ;;  %s1491_s20 = smov [#allocation14]  }
 0x1b0   : > { %1053 = vmatpush3.bf16.msra.mxu0 %v1052_v21  ;;  %1063 = vmatprep.subr.bf16.mxu1 %v1487_v17  ;;  %v1070_v45 = vpack.c.bf16 %v615_v44, %v614_v43  ;;  %p1378_p6 = pnand %p1377_p3, %p1935_p12 }
 0x1b1   : > { %1054 = vmatprep.subr.bf16.mxu0 %v1487_v17  ;;  %v949_v60 = vld [vmem:[%s1933_s11] ss:$0 sm:$0xff] }
 0x1b2   : > { %s1842_s8 = scalar_lea.hbm %s1934_s18, %s951_s17  ;;  %p1379_p0 = pneg %p1378_p6 }
 0x1b3   : > { %1065 = vmatpush3.bf16.msra.mxu1 %v1064_v35 }
 0x1b4   : > { %1056 = vmatpush3.bf16.msra.mxu0 %v1055_v24  ;;  %1066 = vmatprep.subr.bf16.mxu1 %v1487_v17 }
 0x1b5   : > { %1057 = vmatprep.subr.bf16.mxu0 %v1487_v17 }
 0x1b7   : > { %1068 = vmatpush3.bf16.msra.mxu1 %v1067_v42 }
 0x1b8   : > { %1059 = vmatpush3.bf16.msra.mxu0 %v1058_v27  ;;  %1069 = vmatprep.subr.bf16.mxu1 %v1487_v17 }
 0x1b9   : > { %1072 = vmatprep.subr.bf16.mxu0 %v1487_v17 }
 0x1bb   : > { %1010 = vmatmul.mubr.msk.f32.vlgmr.msra.gmra.mrb[0].mxu0 %vm518_vm4, %v1816_v1  ;;  %1071 = vmatpush3.bf16.msra.mxu1 %v1070_v45 }
 0x1bc   : > { %1039 = vmatprep.mubr.msk.f32.mxu0 %vm1488_vm3, %v1489_v20  ;;  %1074 = vmatpush3.bf16.msra.mxu0 %v1073_v36 }
 0x1bd   : > { %1075 = vmatprep.subr.bf16.mxu0 %v1487_v17 }
 0x1be   : > { %1029 = vmatmul.mubr.msk.f32.vlgmr.msra.gmra.mrb[0].mxu1 %vm518_vm4, %v1816_v1 }
 0x1c0   : > { %1077 = vmatpush3.bf16.msra.mxu0 %v1076_v41 }
 0x21d   : > { %v601_v53 = vpop.permute.xlu0 %600 }
 0x28e   : > { %v588_v47 = vpop.f32.mrb[0].mxu0 }
 0x28f   : > { %v592_v48 = vadd.f32 %v588_v47, %v509_v46  ;;  %v1011_v49 = vpop.f32.mrb[1].mxu0 }
 0x291   : > { %v946_v50 = vmul.f32 -1.442695, %v592_v48  ;;  %v682_v56 = vpop.f32.mrb[0].mxu1 }
 0x292   : > { %v1030_v57 = vpop.f32.mrb[1].mxu1 }
 0x293   : > { %1200 = vpow2.f32 %v946_v50 }
 0x29d   : > { %v1201_v51 = vpop.eup %1200 }
 0x29e   : > { %v596_v52 = vadd.f32 1.0, %v1201_v51 }
 0x2a0   : > { %1202 = vrcp.f32 %v596_v52 }
 0x2aa   : > { %v1203_v54 = vpop.eup %1202 }
 0x2ab   : > { %v603_v55 = vmul.f32 %v1203_v54, %v601_v53  ;;  %v771_v0 = vsub.f32 1.0, %v1203_v54 }
 0x2ad   : > { %687 = vrot.lane.b32.xlu0 %v603_v55, %s1490_s15  ;;  %v772_v3 = vmul.f32 %v771_v0, %v1816_v1  ;;  %s1380_s15 = sshll.u32 %s1491_s20, 4  ;;  %s1381_s15 = int_to_ptr.vmem [resolvable:$false] %s1380_s15 }
 0x2ae   : > { %s1382_s19 = scalar_lea.vmem %s1381_s15, 256  ;;  %p1383_p11 = scmp.lt.s32.totalorder %s1844_s12, %s1381_s15 }
 0x2af   : > { %p1384_p1 = scmp.lt.s32.totalorder %s1382_s19, %s1376_s13 }
 0x2b1   : > { %p1385_p2 = por %p1384_p1, %p1383_p11 }
 0x2b3   : > { %p1386_p7 = pnand %p1385_p2, %p1379_p0 }
 0x31f   : > { %v688_v58 = vpop.permute.xlu0 %687 }
 0x320   : > { %1040 = vmatmul.mubr.msk.f32.vlgmr.msra.gmra.mrb[2].mxu0 %vm689_vm5, %v688_v58 }
 0x3f3   : > { %v758_v59 = vpop.f32.mrb[2].mxu0 }
 0x3f4   : > { %v759_v61 = vadd.f32 %v758_v59, %v682_v56  ;;  %v1041_v62 = vpop.f32.mrb[3].mxu0 }
 0x3f6   : > { %v769_v63 = vadd.f32 %v949_v60, %v759_v61 }
 0x3f8   : > { %1204 = vtanh.f32 %v769_v63 }
 0x402   : > { %v1205_v2 = vpop.eup %1204 }
 0x403   : > { %v773_v4 = vmul.f32 %v1205_v2, %v1203_v54 }
 0x405   : > { %v774_v5 = vadd.f32 %v773_v4, %v772_v3 }
 0x407   : > { %775 = vst.msk [vmem:[%s415_s14] sm:$0xff] %vm518_vm4, %v774_v5 }
 0x408   : > { %1389 = shalt.err (!%p1386_p7)
}
 0x409   : > { %s1390_s22 = scalar_lea.hbm %s1842_s8, 128  ;;  %s1394_s21 = scalar_lea.hbm %s1934_s18, 256 }
 0x40a   : > { %p1391_p4 = scmp.ne.s32.totalorder %s1842_s8, %s1390_s22  ;;  %p1395_p9 = scmp.lt.u32.totalorder %s1842_s8, %s1934_s18 }
 0x40b   : > { %p1396_p8 = scmp.lt.u32.totalorder %s1394_s21, %s1390_s22  ;;  %p1398_p3 = scmp.lt.u32.totalorder %s1390_s22, %s1842_s8 }
 0x40c   : > { %p1392_p10 = pnand %p1391_p4, %p1935_p12 }
 0x40d   : > { %p1397_p13 = por %p1396_p8, %p1395_p9 }
 0x40e   : > { %p1393_p5 = pneg %p1392_p10 }
 0x40f   : > { %p1399_p6 = por %p1398_p3, %p1397_p13 }
 0x411   : > { %p1400_p0 = pnand %p1399_p6, %p1393_p5 }
 0x413   : > { %1403 = shalt.err (!%p1400_p0)
}
 0x414   : > { %1100 = dma.vmem_to_hbm [thread:$0]  (%p1935_p12), %s1844_s12, 128, %s1842_s8, %s777_s30  }
 0x415 PF: > { %s803_s16 = sand.u32 1, %s1454_s27   ;;  %p1936_p11 = scmp.ne.s32.totalorder %s1922_s26, 0 }
 0x416   : > { %p1937_p1 = scmp.ge.s32.totalorder %s1474_s10, 2  ;;  %s804_s0 = scalar_lea.sflag [#allocation5], %s803_s16 }
 0x418   : > { %p1123_p2 = pnand %p1937_p1, %p1936_p11 }
 0x41a   : > { %1449 = dma.done.wait (!%p1123_p2), %s804_s0, 128  }
 0x41b   : > { %1451 = vsyncadd (!%p1123_p2), %s804_s0, 4294967168  ;;  %s27_s10 = sadd.s32 1, %s1474_s10   ;;  %s1938_s27 = smov %s1458_s28 }
 0x41c   : > { %p24_p7 = scmp.ge.s32.totalorder %s27_s10, 4   ;;  %s1939_s28 = smov %s1462_s29 }
 0x41d   : > { %s1940_s29 = smov %s1740_s24  ;;  %s1941_s30 = smov %s1470_s9 }
 0x41e   : > { %s1942_s9 = smov %s1944_s25  ;;  %26 = sbr.rel (!%p24_p7) target bundleno = 13 (0xd), region = 123 }
 0x425   :  { %809 = vsyncpa [#allocation4], 1 }
 0x426   :  { %811 = vsyncpa [#allocation4 + $0x1], 1 }
 0x427   :  { %812 = vsyncpa [#allocation7], 1 }
 0x428   :  { %814 = vsyncpa [#allocation7 + $0x1], 1 }
 0x429   :  { %815 = vsyncpa [#allocation10], 1 }
 0x42a   :  { %816 = vsyncpa [#allocation13], 1 }
 0x42b   :  { %817 = vsyncpa [#allocation5], 1 }
 0x42c   :  { %819 = vsyncpa [#allocation5 + $0x1], 1 }

</bundles_post_ra>
